<compile_context>
chip_gen: v7x
topology: tpu7x:2x2x1
jax: 0.10.0
libtpu: 0.0.40
codegen_flags: <defaults>
</compile_context>

<pallas_src>
import functools

import jax
import jax.numpy as jnp
from jax import lax
from jax.experimental import pallas as pl
from jax.experimental.pallas import tpu as pltpu

_NEG_SLOPE = 0.05


# ---------------------------------------------------------------------------
# Kernels
# ---------------------------------------------------------------------------
def _softmax_single_block_kernel(x_ref, w_ref, b_ref, o_ref):
    """Whole weight resident in VMEM; one batch tile per grid step."""
    x = x_ref[...]                                   # (TB, In)
    w = w_ref[...]                                   # (Out, In) torch layout
    b = b_ref[...].astype(jnp.float32)               # (1, Out)

    # x @ W^T + b: contract dim 1 with dim 1 (transposed-B form); the MXU
    # consumes this natively, no per-step vxpose of the resident weight.
    y = lax.dot_general(x, w, (((1,), (1,)), ((), ())),
                        preferred_element_type=jnp.float32) + b

    # LeakyReLU(0.05): single VALU max (exact for slope < 1).
    y = jnp.maximum(y, _NEG_SLOPE * y)

    # Numerically stable softmax over the lane axis.
    m = jnp.max(y, axis=-1, keepdims=True)
    e = jnp.exp(y - m)
    denom = jnp.sum(e, axis=-1, keepdims=True)
    # Exact reciprocal: approx=True (EUP vrcp) breaks the 1e-5 tolerance.
    inv = pl.reciprocal(denom, approx=False)
    o_ref[...] = (e * inv).astype(o_ref.dtype)


def _softmax_ntiled_kernel(x_ref, w_ref, b_ref, o_ref, m_ref, l_ref, *, tn):
    """Online softmax over an N-tiled (streamed) weight.

    Grid = (batch tiles ["parallel"], output tiles ["arbitrary"]). The output
    block is the full (padded) output width, resident across the n axis; it
    accumulates un-normalized exp() values referenced to the running max and
    is normalized in place on the last n step.
    """
    n = pl.program_id(1)
    last = pl.num_programs(1) - 1

    @pl.when(n == 0)
    def _():
        m_ref[...] = jnp.full_like(m_ref, -jnp.inf)
        l_ref[...] = jnp.zeros_like(l_ref)
        o_ref[...] = jnp.zeros_like(o_ref)

    x = x_ref[...]                                   # (TB, In), resident over n
    w = w_ref[...]                                   # (TN, In)
    b = b_ref[...].astype(jnp.float32)               # (1, TN)

    y = lax.dot_general(x, w, (((1,), (1,)), ((), ())),
                        preferred_element_type=jnp.float32) + b
    y = jnp.maximum(y, _NEG_SLOPE * y)

    m_prev = m_ref[...]
    m_new = jnp.maximum(m_prev, jnp.max(y, axis=-1, keepdims=True))
    alpha = jnp.exp(m_prev - m_new)                  # rescale for earlier tiles
    e = jnp.exp(y - m_new)
    l_ref[...] = alpha * l_ref[...] + jnp.sum(e, axis=-1, keepdims=True)
    m_ref[...] = m_new

    # Rescale previously written tiles (zero-initialized, so untouched columns
    # stay zero), then drop in this tile's un-normalized exps.
    @pl.when(n > 0)
    def _():
        o_ref[...] = o_ref[...] * alpha.astype(o_ref.dtype)

    col = pl.multiple_of(n * tn, tn)
    o_ref[:, pl.ds(col, tn)] = e.astype(o_ref.dtype)

    @pl.when(n == last)
    def _():
        inv = pl.reciprocal(l_ref[...], approx=False)
        o_ref[...] = (o_ref[...].astype(jnp.float32) * inv).astype(o_ref.dtype)


# ---------------------------------------------------------------------------
# Tiling / wrapper
# ---------------------------------------------------------------------------
def _sublane_multiple(dtype):
    # f32 -> 8, bf16 -> 16, int8/fp8 -> 32 (sub-32-bit dtypes pack sublanes).
    return max(8, 32 // jnp.dtype(dtype).itemsize)


def _vmem_budget_bytes():
    # Generation-aware budget: ~75% of physical VMEM (v5e/v6e 128 MiB -> 96,
    # v7x 64 MiB -> 48), leaving headroom for compiler scratch.
    phys = 64 * 1024 * 1024
    try:
        phys = int(pltpu.get_tpu_info().vmem_capacity_bytes)
    except Exception:
        pass
    phys = min(phys, 128 * 1024 * 1024)
    return (phys * 3) // 4


def _round_down(x, m):
    return max(m, (x // m) * m)


def _pick_tiles(batch, num_inputs, num_outputs, itemsize, sublane, budget,
                batch_tile=None, n_tile=None):
    """Byte-budgeted tile selection.

    Returns (tb, tn, out_pad, padded_batch); tn is None when the whole weight
    fits the VMEM budget (single-block kernel)."""
    slack = 1 << 20                                   # headroom

    # Whole-weight cost: one W copy (Buffered(1)) + bias + dbl-buffered x/out.
    w_whole = num_outputs * num_inputs * itemsize + num_outputs * itemsize
    per_row = 2 * (num_inputs + num_outputs) * itemsize
    single_ok = w_whole + slack + per_row * sublane <= budget

    if n_tile is None and single_ok:
        tn = None
        out_pad = num_outputs
        tb_cap = _round_down((budget - slack - w_whole) // per_row, sublane)
    else:
        if n_tile is not None:
            tn = int(n_tile)
        else:
            tn = 512
            while tn > 128 and 2 * tn * num_inputs * itemsize > budget // 4:
                tn //= 2
        out_pad = -(-num_outputs // tn) * tn
        fixed = 2 * tn * (num_inputs + 1) * itemsize + slack
        per_row = 2 * (num_inputs + out_pad) * itemsize
        tb_cap = _round_down(max(sublane, (budget - fixed) // per_row), sublane)

    # Target ~2 MiB activation tile (>=512-wide tiles reach ~85%+ of roofline).
    tb_target = _round_down(max(sublane, (2 << 20) // max(1, num_inputs * itemsize)),
                            sublane)
    tb = min(tb_cap, tb_target)
    if batch_tile is not None:
        tb = _round_down(int(batch_tile), sublane)

    padded_batch = -(-batch // sublane) * sublane
    if tb >= padded_batch:
        # >= 2 grid steps whenever the batch allows, so the "parallel" batch
        # axis can shard across v7x's two TensorCores.
        if padded_batch >= 2 * sublane:
            tb = _round_down(padded_batch // 2, sublane)
        else:
            tb = padded_batch
    padded_batch = -(-batch // tb) * tb
    return tb, tn, out_pad, padded_batch


def softmax_module_forward(x, w, b, *, batch_tile=None, n_tile=None):
    """x: [B, num_inputs]; w: [num_outputs, num_inputs] (torch Linear layout);
    b: [num_outputs]. Returns softmax(leaky_relu(x @ w.T + b, 0.05), axis=-1)."""
    batch, num_inputs = x.shape
    num_outputs, k = w.shape
    assert k == num_inputs, (w.shape, x.shape)

    itemsize = jnp.dtype(x.dtype).itemsize
    sublane = _sublane_multiple(x.dtype)
    budget = _vmem_budget_bytes()

    tb, tn, out_pad, padded_batch = _pick_tiles(
        batch, num_inputs, num_outputs, itemsize, sublane, budget,
        batch_tile=batch_tile, n_tile=n_tile)

    xp = x
    if padded_batch != batch:
        xp = jnp.pad(x, ((0, padded_batch - batch), (0, 0)))
    b2 = b.reshape(1, num_outputs)

    compiler_params = pltpu.CompilerParams(
        dimension_semantics=("parallel",) if tn is None else ("parallel", "arbitrary"),
        vmem_limit_bytes=budget,
    )

    if tn is None:
        # ------ whole weight resident in VMEM (single buffer) ------
        out = pl.pallas_call(
            _softmax_single_block_kernel,
            out_shape=jax.ShapeDtypeStruct((padded_batch, num_outputs), x.dtype),
            grid_spec=pltpu.PrefetchScalarGridSpec(
                num_scalar_prefetch=0,
                grid=(padded_batch // tb,),
                in_specs=[
                    pl.BlockSpec((tb, num_inputs), lambda i: (i, 0)),
                    # grid-invariant weight / bias: single VMEM buffer
                    pl.BlockSpec((num_outputs, num_inputs), lambda i: (0, 0),
                                 pipeline_mode=pl.Buffered(1)),
                    pl.BlockSpec((1, num_outputs), lambda i: (0, 0),
                                 pipeline_mode=pl.Buffered(1)),
                ],
                out_specs=pl.BlockSpec((tb, num_outputs), lambda i: (i, 0)),
            ),
            compiler_params=compiler_params,
        )(xp, w, b2)
    else:
        # ------ N-tiled online-softmax path (W streamed in (tn, In) slabs) ------
        wp, bp = w, b2
        if out_pad != num_outputs:
            wp = jnp.pad(w, ((0, out_pad - num_outputs), (0, 0)))
            # Padded output columns get a huge negative bias so exp() == 0 and
            # they never perturb the softmax denominator.
            bp = jnp.pad(b2, ((0, 0), (0, out_pad - num_outputs)),
                         constant_values=-1e30)
        out = pl.pallas_call(
            functools.partial(_softmax_ntiled_kernel, tn=tn),
            out_shape=jax.ShapeDtypeStruct((padded_batch, out_pad), x.dtype),
            grid_spec=pltpu.PrefetchScalarGridSpec(
                num_scalar_prefetch=0,
                grid=(padded_batch // tb, out_pad // tn),
                in_specs=[
                    pl.BlockSpec((tb, num_inputs), lambda i, n: (i, 0)),
                    pl.BlockSpec((tn, num_inputs), lambda i, n: (n, 0)),
                    pl.BlockSpec((1, tn), lambda i, n: (0, n)),
                ],
                out_specs=pl.BlockSpec((tb, out_pad), lambda i, n: (i, 0)),
                scratch_shapes=[pltpu.VMEM((tb, 1), jnp.float32),   # running max
                                pltpu.VMEM((tb, 1), jnp.float32)],  # running sum
            ),
            compiler_params=compiler_params,
        )(xp, wp, bp)
        if out_pad != num_outputs:
            out = out[:, :num_outputs]

    if padded_batch != batch:
        out = out[:batch]
    return out


def _reference(x, w, b):
    y = x @ w.T + b
    y = jnp.where(y >= 0, y, _NEG_SLOPE * y)
    return jax.nn.softmax(y, axis=-1)


if __name__ == "__main__":
    key = jax.random.PRNGKey(0)
    k_x, k_w, k_b, k_x2, k_w2, k_b2 = jax.random.split(key, 6)

    # --- Case 1: tiny layer -> weight-resident single-block path -------------
    batch, num_inputs, num_outputs = 8, 32, 16
    x = jax.random.normal(k_x, (batch, num_inputs), dtype=jnp.float32)
    bound = 1.0 / (num_inputs ** 0.5)
    w = jax.random.uniform(k_w, (num_outputs, num_inputs), jnp.float32, -bound, bound)
    b = jax.random.uniform(k_b, (num_outputs,), jnp.float32, -bound, bound)

    out = jax.block_until_ready(softmax_module_forward(x, w, b))
    ref = _reference(x, w, b)
    assert out.shape == (batch, num_outputs)
    assert jnp.allclose(out, ref, atol=1e-5, rtol=1e-5)
    assert jnp.allclose(jnp.sum(out, axis=-1), jnp.ones((batch,)), atol=1e-5)

    # --- Case 2: force the N-tiled online-softmax path (also exercises the
    # ragged-batch padding and the >=2-step parallel batch grid) --------------
    batch2, num_inputs2, num_outputs2 = 20, 64, 256
    x2 = jax.random.normal(k_x2, (batch2, num_inputs2), dtype=jnp.float32)
    bound2 = 1.0 / (num_inputs2 ** 0.5)
    w2 = jax.random.uniform(k_w2, (num_outputs2, num_inputs2), jnp.float32, -bound2, bound2)
    b2 = jax.random.uniform(k_b2, (num_outputs2,), jnp.float32, -bound2, bound2)

    out2 = jax.block_until_ready(softmax_module_forward(x2, w2, b2, n_tile=128))
    ref2 = _reference(x2, w2, b2)
    assert out2.shape == (batch2, num_outputs2)
    assert jnp.allclose(out2, ref2, atol=1e-5, rtol=1e-5)
    assert jnp.allclose(jnp.sum(out2, axis=-1), jnp.ones((batch2,)), atol=1e-5)

    print("KERNEL_OK")
</pallas_src>

<mosaic_0001>
module attributes {stable_mosaic.version = 11 : i64} {
  func.func @_softmax_single_block_kernel(%arg0: i32, %arg1: memref<8x32xf32, #tpu.memory_space<vmem>>, %arg2: memref<16x32xf32, #tpu.memory_space<vmem>>, %arg3: memref<1x16xf32, #tpu.memory_space<vmem>>, %arg4: memref<8x16xf32, #tpu.memory_space<vmem>>) attributes {dimension_semantics = [#tpu.dimension_semantics<parallel>], iteration_bounds = array<i64: 1>, scalar_prefetch = 0 : i64, scratch_operands = 0 : i64, tpu.core_type = #tpu.core_type<tc>, window_params = [{transform_indices = @transform_0, window_bounds = array<i64: 8, 32>}, {pipeline_mode = #tpu.pipeline_mode<synchronous>, transform_indices = @transform_1, window_bounds = array<i64: 16, 32>}, {pipeline_mode = #tpu.pipeline_mode<synchronous>, transform_indices = @transform_2, window_bounds = array<i64: 1, 16>}, {transform_indices = @transform_3, window_bounds = array<i64: 8, 16>}]} {
    %c0 = arith.constant 0 : index
    %c0_0 = arith.constant 0 : index
    %0 = vector.load %arg1[%c0, %c0_0] : memref<8x32xf32, #tpu.memory_space<vmem>>, vector<8x32xf32>
    %c0_1 = arith.constant 0 : index
    %c0_2 = arith.constant 0 : index
    %1 = vector.load %arg2[%c0_1, %c0_2] : memref<16x32xf32, #tpu.memory_space<vmem>>, vector<16x32xf32>
    %c0_3 = arith.constant 0 : index
    %c0_4 = arith.constant 0 : index
    %2 = vector.load %arg3[%c0_3, %c0_4] : memref<1x16xf32, #tpu.memory_space<vmem>>, vector<1x16xf32>
    %cst = arith.constant dense<0.000000e+00> : vector<8x16xf32>
    %3 = tpu.matmul %0, %1, %cst {dimension_numbers = #tpu.dot_dimension_numbers<[1], [1], [0], [0], [0, 0, 1, 0], [], []>} : vector<8x32xf32>, vector<16x32xf32>, vector<8x16xf32> -> vector<8x16xf32>
    %4 = vector.broadcast %2 : vector<1x16xf32> to vector<8x16xf32>
    %5 = arith.addf %3, %4 : vector<8x16xf32>
    %cst_5 = arith.constant 5.000000e-02 : f32
    %6 = vector.broadcast %cst_5 : f32 to vector<8x16xf32>
    %7 = arith.mulf %6, %5 : vector<8x16xf32>
    %8 = arith.maximumf %5, %7 : vector<8x16xf32>
    %cst_6 = arith.constant dense<0xFF800000> : vector<8xf32>
    %9 = vector.multi_reduction <maximumf>, %8, %cst_6 [1] : vector<8x16xf32> to vector<8xf32>
    %10 = vector.shape_cast %9 : vector<8xf32> to vector<8x1xf32>
    %11 = vector.broadcast %10 : vector<8x1xf32> to vector<8x16xf32>
    %12 = arith.subf %8, %11 : vector<8x16xf32>
    %13 = math.exp %12 : vector<8x16xf32>
    %cst_7 = arith.constant dense<0.000000e+00> : vector<8xf32>
    %14 = vector.multi_reduction <add>, %13, %cst_7 [1] : vector<8x16xf32> to vector<8xf32>
    %15 = vector.shape_cast %14 : vector<8xf32> to vector<8x1xf32>
    %16 = tpu.reciprocal %15 : vector<8x1xf32> -> vector<8x1xf32>
    %17 = vector.broadcast %16 : vector<8x1xf32> to vector<8x16xf32>
    %18 = arith.mulf %13, %17 : vector<8x16xf32>
    %c0_8 = arith.constant 0 : index
    %c0_9 = arith.constant 0 : index
    %19 = vector.load %arg4[%c0_8, %c0_9] : memref<8x16xf32, #tpu.memory_space<vmem>>, vector<8x16xf32>
    tpu.vector_store %arg4[%c0_8, %c0_9], %18 {strides = array<i32>} : memref<8x16xf32, #tpu.memory_space<vmem>>, vector<8x16xf32>,
    return
  }
  func.func @transform_0(%arg0: i32) -> (i32, i32) {
    %c0_i32 = arith.constant 0 : i32
    %c0_i32_0 = arith.constant 0 : i32
    return %arg0, %c0_i32 : i32, i32
  }
  func.func @transform_1(%arg0: i32) -> (i32, i32) {
    %c0_i32 = arith.constant 0 : i32
    %c0_i32_0 = arith.constant 0 : i32
    %c0_i32_1 = arith.constant 0 : i32
    return %c0_i32, %c0_i32_0 : i32, i32
  }
  func.func @transform_2(%arg0: i32) -> (i32, i32) {
    %c0_i32 = arith.constant 0 : i32
    %c0_i32_0 = arith.constant 0 : i32
    %c0_i32_1 = arith.constant 0 : i32
    return %c0_i32, %c0_i32_0 : i32, i32
  }
  func.func @transform_3(%arg0: i32) -> (i32, i32) {
    %c0_i32 = arith.constant 0 : i32
    %c0_i32_0 = arith.constant 0 : i32
    return %arg0, %c0_i32 : i32, i32
  }
}

</mosaic_0001>

<bundles_post_ra>
// kernel: tpu_custom_call.1
= control target key start
LH: loop header
LB: loop body
LE: loop exit
PB: predicated region body
PF: predicated region fallthrough
CT: control target
= control target key end

     0   :  { %8 = vsyncpa [#allocation3], 0  ;;  %s341_s0 = inlined_call_operand.hbm [shape: f32[8,32], index: 0, kind: input, shape index: {}]   ;;  %s342_s1 = inlined_call_operand.hbm [shape: f32[16,32], index: 1, kind: input, shape index: {}]   ;;  %s343_s2 = inlined_call_operand.vmem [shape: f32[1,16], index: 2, kind: input, shape index: {}]   ;;  %s344_s3 = inlined_call_operand.hbm [shape: f32[8,16], index: 3, kind: output, shape index: {}]  }
   0x1   :  { %9 = vsyncpa [#allocation6], 0 }
   0x2   :  { %10 = vsyncpa [#allocation4], 0  ;;  %s264_s12 = smov [#allocation2]   ;;  %s265_s14 = smov [#allocation5]  }
   0x3   :  { %s17_s13 = sshll.u32 %s264_s12, 4  ;;  %s26_s15 = sshll.u32 %s265_s14, 4  ;;  %s18_s13 = int_to_ptr.vmem [resolvable:$true] %s17_s13  ;;  %s292_s15 = int_to_ptr.vmem [resolvable:$true] %s26_s15 }
   0x4   :  { %s192_s18 = scalar_lea.hbm %s341_s0, 128 }
   0x5   :  { %p193_p0 = scmp.ne.s32.totalorder %s341_s0, %s192_s18  ;;  %p196_p1 = scmp.lt.u32.totalorder %s192_s18, %s341_s0 }
   0x7   :  { %p198_p2 = pnand %p196_p1, %p193_p0 }
   0x9   :  { %201 = shalt.err (!%p198_p2)
}
   0xa   :  { %s202_s23 = scalar_lea.vmem %s18_s13, 128  ;;  %p207_p4 = scmp.lt.s32.totalorder %s18_s13, %s18_s13 }
   0xb   :  { %p203_p3 = scmp.ne.s32.totalorder %s18_s13, %s202_s23  ;;  %p208_p5 = scmp.lt.s32.totalorder %s202_s23, %s202_s23 }
   0xd   :  { %p209_p6 = por %p208_p5, %p207_p4 }
   0xf   :  { %p210_p7 = pnand %p209_p6, %p203_p3 }
  0x11   :  { %213 = shalt.err (!%p210_p7)
}
  0x12   :  { %20 = dma.hbm_to_vmem [thread:$0]  %s341_s0, 128, %s18_s13, [#allocation3]  }
  0x13   :  { %s214_s28 = scalar_lea.hbm %s342_s1, 256 }
  0x14   :  { %p215_p8 = scmp.ne.s32.totalorder %s342_s1, %s214_s28  ;;  %p218_p9 = scmp.lt.u32.totalorder %s214_s28, %s342_s1 }
  0x16   :  { %p220_p10 = pnand %p218_p9, %p215_p8 }
  0x18   :  { %223 = shalt.err (!%p220_p10)
}
  0x19   :  { %s224_s6 = scalar_lea.vmem %s292_s15, 256  ;;  %p229_p12 = scmp.lt.s32.totalorder %s292_s15, %s292_s15 }
  0x1a   :  { %p225_p11 = scmp.ne.s32.totalorder %s292_s15, %s224_s6  ;;  %p230_p13 = scmp.lt.s32.totalorder %s224_s6, %s224_s6 }
  0x1c   :  { %p231_p0 = por %p230_p13, %p229_p12 }
  0x1e   :  { %p232_p1 = pnand %p231_p0, %p225_p11 }
  0x20   :  { %235 = shalt.err (!%p232_p1)
}
  0x21   :  { %s266_s0 = smov 128   ;;  %s267_s7 = smov 8  }
  0x22   :  { %32 = dma.hbm_to_vmem [thread:$0]  %s342_s1, 256, %s292_s15, [#allocation6], %s266_s0, %s266_s0, %s267_s7  }
  0x23   :  { %258 = dma.done.wait [#allocation3], 128  }
  0x24   :  { %259 = vsyncadd [#allocation3], 4294967168 }
  0x25   :  { %260 = dma.done.wait [#allocation6], 256  }
  0x26   :  { %261 = vsyncadd [#allocation6], 4294967040  ;;  %v268_v0 = vmov 0.0|0.0   ;;  %vm269_vm0 = vmmov 0   ;;  %v270_v1 = vmov 0.0   ;;  %vm51_vm1 = vcmask 261120  }
  0x27   :  { %176 = vmatprep.subr.bf16.mxu0 %v268_v0  ;;  %173 = vmatprep.mubr.msk.f32.mxu0 %vm269_vm0, %v270_v1  ;;  %v42_v2 = vld [vmem:[#allocation5] sm:$0xff]  ;;  %v43_v3 = vld [vmem:[#allocation5 + $0x8] sm:$0xff]  ;;  %vm178_vm2 = vmpackc.low %vm51_vm1, %vm51_vm1  ;;  %vm133_vm3 = vcmask 130048   ;;  %s271_s1 = smov [#allocation7]  }
  0x28   :  { %v177_v4 = vpack.c.bf16 %v43_v3, %v42_v2  ;;  %v41_v5 = vld [vmem:[#allocation2] sm:$0xff] }
  0x29   :  { %v162_v6 = vld [vmem:[%s343_s2] ss:$0 sm:$0xff]  ;;  %s152_s2 = sshll.u32 %s271_s1, 4  ;;  %s153_s2 = int_to_ptr.vmem [resolvable:$true] %s152_s2 }
  0x2a   :  { %179 = vmatpush3.bf16.xpose.msk.msra.mxu0 %vm178_vm2, %v177_v4  ;;  %s236_s12 = scalar_lea.vmem %s153_s2, 128  ;;  %p241_p3 = scmp.lt.s32.totalorder %s153_s2, %s153_s2 }
  0x2b   :  { %p237_p2 = scmp.ne.s32.totalorder %s153_s2, %s236_s12  ;;  %p242_p4 = scmp.lt.s32.totalorder %s236_s12, %s236_s12 }
  0x2d   :  { %p243_p5 = por %p242_p4, %p241_p3 }
  0x2f   :  { %p244_p6 = pnand %p243_p5, %p237_p2 }
  0x31   :  { %174 = vmatmul.mubr.msk.f32.vlgmr.msra.gmra.mrb[0].mxu0 %vm51_vm1, %v41_v5 }
 0x104   :  { %v127_v7 = vpop.f32.mrb[0].mxu0 }
 0x105   :  { %v128_v8 = vadd.f32 %v162_v6, %v127_v7  ;;  %v175_v9 = vpop.f32.mrb[1].mxu0 }
 0x107   :  { %v131_v10 = vmul.f32 0.05, %v128_v8 }
 0x109   :  { %v132_v11 = vmax.f32 %v128_v8, %v131_v10 }
 0x10b   :  { %v134_v12 = vsel %vm133_vm3, %v132_v11, -inf }
 0x10c   :  { %135 = vmax.xlane.f32.xlu0 %v134_v12 }
 0x199   :  { %v136_v13 = vpop.xlane.xlu0 %135 }
 0x19a   :  { %v137_v14 = vsub.f32 %v132_v11, %v136_v13 }
 0x19c   :  { %v138_v15 = vmul.f32 1.442695, %v137_v14 }
 0x19e   :  { %188 = vpow2.f32 %v138_v15 }
 0x1a8   :  { %v189_v16 = vpop.eup %188 }
 0x1a9   :  { %v140_v17 = vsel %vm133_vm3, %v189_v16, 0.0 }
 0x1aa   :  { %141 = vadd.xlane.f32.xlu0 %v140_v17 }
 0x237   :  { %v142_v18 = vpop.xlane.xlu0 %141 }
 0x238   :  { %190 = vrcp.f32 %v142_v18 }
 0x242   :  { %v191_v19 = vpop.eup %190 }
 0x243   :  { %v144_v20 = vmul.f32 %v191_v19, %v189_v16 }
 0x245   :  { %145 = vst.msk [vmem:[#allocation7] sm:$0xff] %vm133_vm3, %v144_v20 }
 0x246   :  { %247 = shalt.err (!%p244_p6)
}
 0x247   :  { %s248_s15 = scalar_lea.hbm %s344_s3, 128 }
 0x248   :  { %p249_p7 = scmp.ne.s32.totalorder %s344_s3, %s248_s15  ;;  %p252_p8 = scmp.lt.u32.totalorder %s248_s15, %s344_s3 }
 0x24a   :  { %p254_p9 = pnand %p252_p8, %p249_p7 }
 0x24c   :  { %257 = shalt.err (!%p254_p9)
}
 0x24d   :  { %155 = dma.vmem_to_hbm [thread:$0]  %s153_s2, 128, %s344_s3, [#allocation4]  }
 0x24e   :  { %262 = dma.done.wait [#allocation4], 128  }
 0x24f   :  { %263 = vsyncadd [#allocation4], 4294967168 }
 0x250   :  { %159 = vsyncpa [#allocation3], 1 }
 0x251   :  { %160 = vsyncpa [#allocation6], 1 }
 0x252   :  { %161 = vsyncpa [#allocation4], 1 }

</bundles_post_ra>
